<compile_context>
chip_gen: v5e
topology: v5e:2x2
jax: 0.10.0
libtpu: 0.0.40
codegen_flags: <defaults>
</compile_context>

<pallas_src>
import jax
import jax.numpy as jnp
import numpy as np
from jax.experimental import pallas as pl
from jax.experimental.pallas import tpu as pltpu


INPUT_SIZE = 37
HIDDEN_SIZES = [400, 300]
OUTPUT_SIZE = 4

# (8,128)-aligned padded dims.
IN_P = 128
H1_P = 512
H2_P = 384
OUT_P = 128

DEFAULT_TILE_BATCH = 256  # 128 is also fine (v5e sweet spot); both are multiples of 8.


def _round_up(x, m):
    return ((x + m - 1) // m) * m


def mlp_kernel(x_ref, w1_ref, b1_ref, w2_ref, b2_ref, w3_ref, b3_ref, o_ref):
    # Hidden layer 1: relu(x @ W1 + b1); bf16 MXU inputs, f32 accumulate.
    x = x_ref[...]
    h = jnp.dot(x.astype(jnp.bfloat16), w1_ref[...],
                preferred_element_type=jnp.float32)
    h = jnp.maximum(h + b1_ref[...], 0.0)
    # Hidden layer 2: relu(h @ W2 + b2)
    h = jnp.dot(h.astype(jnp.bfloat16), w2_ref[...],
                preferred_element_type=jnp.float32)
    h = jnp.maximum(h + b2_ref[...], 0.0)
    # Output layer (no activation); lane-dense (TB, 128) store.
    o = jnp.dot(h.astype(jnp.bfloat16), w3_ref[...],
                preferred_element_type=jnp.float32)
    o_ref[...] = (o + b3_ref[...]).astype(o_ref.dtype)


def network_forward(x, params, tile_batch=DEFAULT_TILE_BATCH):
    """x: (batch, INPUT_SIZE) f32.  params: padded (w1,b1,w2,b2,w3,b3)."""
    w1, b1, w2, b2, w3, b3 = params
    batch = x.shape[0]

    # Batch tile: multiple of 8 sublanes, capped at tile_batch.
    tb = min(tile_batch, max(8, _round_up(batch, 8)))
    batch_p = _round_up(batch, tb)

    # Zero-pad batch and feature dims (padding contributes nothing: zero rows
    # of W1 and zero bias padding keep padded lanes at 0 through ReLU).
    x_p = jnp.zeros((batch_p, IN_P), jnp.float32)
    x_p = x_p.at[:batch, :INPUT_SIZE].set(x.astype(jnp.float32))

    grid = (batch_p // tb,)

    out = pl.pallas_call(
        mlp_kernel,
        out_shape=jax.ShapeDtypeStruct((batch_p, OUT_P), jnp.float32),
        grid=grid,
        in_specs=[
            pl.BlockSpec((tb, IN_P), lambda i: (i, 0)),     # x tile (pipelined)
            pl.BlockSpec((IN_P, H1_P), lambda i: (0, 0)),   # W1 (resident)
            pl.BlockSpec((1, H1_P), lambda i: (0, 0)),      # b1
            pl.BlockSpec((H1_P, H2_P), lambda i: (0, 0)),   # W2
            pl.BlockSpec((1, H2_P), lambda i: (0, 0)),      # b2
            pl.BlockSpec((H2_P, OUT_P), lambda i: (0, 0)),  # W3
            pl.BlockSpec((1, OUT_P), lambda i: (0, 0)),     # b3
        ],
        out_specs=pl.BlockSpec((tb, OUT_P), lambda i: (i, 0)),
        compiler_params=pltpu.CompilerParams(
            dimension_semantics=("parallel",),   # shard batch tiles across v7x cores
            vmem_limit_bytes=32 << 20,
        ),
    )(x_p, w1, b1, w2, b2, w3, b3)

    # Strip batch + lane padding (free layout plumbing in the wrapper).
    return out[:batch, :OUTPUT_SIZE]


def init_params(seed=0):
    """Deterministic init mirroring Network.reset_parameters():
       hidden weights ~ U(-1/sqrt(fan_out), 1/sqrt(fan_out)), bias = 0.1,
       output weights ~ U(-0.003, 0.003), bias = 0.1.
       (Same distributions as PyTorch; RNG stream itself is JAX's.)
       Weights are zero-padded to hardware shapes and stored in bf16;
       biases are zero-padded and kept f32."""
    key = jax.random.PRNGKey(seed)

    def pad_w(w, rows, cols):
        out = jnp.zeros((rows, cols), jnp.float32)
        return out.at[: w.shape[0], : w.shape[1]].set(w).astype(jnp.bfloat16)

    def pad_b(fan_out, cols):
        out = jnp.zeros((1, cols), jnp.float32)
        return out.at[0, :fan_out].set(0.1)

    sizes = [INPUT_SIZE] + HIDDEN_SIZES + [OUTPUT_SIZE]
    padded = [(IN_P, H1_P), (H1_P, H2_P), (H2_P, OUT_P)]
    params = []
    # Hidden layers
    for li in range(len(HIDDEN_SIZES)):
        fan_in, fan_out = sizes[li], sizes[li + 1]
        key, wk = jax.random.split(key)
        lim = 1.0 / np.sqrt(fan_out)  # f = weight.size()[0] = out features
        w = jax.random.uniform(wk, (fan_in, fan_out), jnp.float32, -lim, lim)
        params += [pad_w(w, *padded[li]), pad_b(fan_out, padded[li][1])]
    # Output layer
    key, wk = jax.random.split(key)
    w_out = jax.random.uniform(
        wk, (HIDDEN_SIZES[-1], OUTPUT_SIZE), jnp.float32, -0.003, 0.003
    )
    params += [pad_w(w_out, *padded[-1]), pad_b(OUTPUT_SIZE, OUT_P)]
    return tuple(params)


def reference_forward(x, params):
    """Pure-JAX reference mirroring the kernel math (bf16 dot inputs, f32 acc)."""
    w1, b1, w2, b2, w3, b3 = params
    x_p = jnp.zeros((x.shape[0], IN_P), jnp.float32).at[:, :INPUT_SIZE].set(x)
    h = jnp.dot(x_p.astype(jnp.bfloat16), w1, preferred_element_type=jnp.float32)
    h = jnp.maximum(h + b1, 0.0)
    h = jnp.dot(h.astype(jnp.bfloat16), w2, preferred_element_type=jnp.float32)
    h = jnp.maximum(h + b2, 0.0)
    o = jnp.dot(h.astype(jnp.bfloat16), w3, preferred_element_type=jnp.float32) + b3
    return o[:, :OUTPUT_SIZE]


if __name__ == "__main__":
    key = jax.random.PRNGKey(0)
    batch = 8
    x = jax.random.normal(key, (batch, INPUT_SIZE), jnp.float32)

    params = init_params(seed=0)

    out = network_forward(x, params)
    out = jax.block_until_ready(out)

    ref = reference_forward(x, params)
    np.testing.assert_allclose(np.asarray(out), np.asarray(ref), rtol=1e-2, atol=1e-2)

    assert out.shape == (batch, OUTPUT_SIZE)
    print("KERNEL_OK")
</pallas_src>

<mosaic_0001>
module attributes {stable_mosaic.version = 11 : i64} {
  func.func @mlp_kernel(%arg0: i32, %arg1: memref<8x128xf32, #tpu.memory_space<vmem>>, %arg2: memref<128x512xbf16, #tpu.memory_space<vmem>>, %arg3: memref<1x512xf32, #tpu.memory_space<vmem>>, %arg4: memref<512x384xbf16, #tpu.memory_space<vmem>>, %arg5: memref<1x384xf32, #tpu.memory_space<vmem>>, %arg6: memref<384x128xbf16, #tpu.memory_space<vmem>>, %arg7: memref<1x128xf32, #tpu.memory_space<vmem>>, %arg8: memref<8x128xf32, #tpu.memory_space<vmem>>) attributes {dimension_semantics = [#tpu.dimension_semantics<parallel>], iteration_bounds = array<i64: 1>, scalar_prefetch = 0 : i64, scratch_operands = 0 : i64, tpu.core_type = #tpu.core_type<tc>, window_params = [{transform_indices = @transform_0, window_bounds = array<i64: 8, 128>}, {pipeline_mode = #tpu.pipeline_mode<synchronous>, transform_indices = @transform_1, window_bounds = array<i64: 128, 512>}, {pipeline_mode = #tpu.pipeline_mode<synchronous>, transform_indices = @transform_2, window_bounds = array<i64: 1, 512>}, {pipeline_mode = #tpu.pipeline_mode<synchronous>, transform_indices = @transform_3, window_bounds = array<i64: 512, 384>}, {pipeline_mode = #tpu.pipeline_mode<synchronous>, transform_indices = @transform_4, window_bounds = array<i64: 1, 384>}, {pipeline_mode = #tpu.pipeline_mode<synchronous>, transform_indices = @transform_5, window_bounds = array<i64: 384, 128>}, {pipeline_mode = #tpu.pipeline_mode<synchronous>, transform_indices = @transform_6, window_bounds = array<i64: 1, 128>}, {transform_indices = @transform_7, window_bounds = array<i64: 8, 128>}]} {
    %c0 = arith.constant 0 : index
    %c0_0 = arith.constant 0 : index
    %0 = vector.load %arg1[%c0, %c0_0] : memref<8x128xf32, #tpu.memory_space<vmem>>, vector<8x128xf32>
    %1 = arith.truncf %0 : vector<8x128xf32> to vector<8x128xbf16>
    %c0_1 = arith.constant 0 : index
    %c0_2 = arith.constant 0 : index
    %2 = vector.load %arg2[%c0_1, %c0_2] : memref<128x512xbf16, #tpu.memory_space<vmem>>, vector<128x512xbf16>
    %cst = arith.constant dense<0.000000e+00> : vector<8x512xf32>
    %3 = tpu.matmul %1, %2, %cst {dimension_numbers = #tpu.dot_dimension_numbers<[1], [0], [0], [1], [0, 0, 1, 1], [], []>} : vector<8x128xbf16>, vector<128x512xbf16>, vector<8x512xf32> -> vector<8x512xf32>
    %c0_3 = arith.constant 0 : index
    %c0_4 = arith.constant 0 : index
    %4 = vector.load %arg3[%c0_3, %c0_4] : memref<1x512xf32, #tpu.memory_space<vmem>>, vector<1x512xf32>
    %5 = vector.broadcast %4 : vector<1x512xf32> to vector<8x512xf32>
    %6 = arith.addf %3, %5 : vector<8x512xf32>
    %cst_5 = arith.constant 0.000000e+00 : f32
    %7 = vector.broadcast %cst_5 : f32 to vector<8x512xf32>
    %8 = arith.maximumf %6, %7 : vector<8x512xf32>
    %9 = arith.truncf %8 : vector<8x512xf32> to vector<8x512xbf16>
    %c0_6 = arith.constant 0 : index
    %c0_7 = arith.constant 0 : index
    %10 = vector.load %arg4[%c0_6, %c0_7] : memref<512x384xbf16, #tpu.memory_space<vmem>>, vector<512x384xbf16>
    %cst_8 = arith.constant dense<0.000000e+00> : vector<8x384xf32>
    %11 = tpu.matmul %9, %10, %cst_8 {dimension_numbers = #tpu.dot_dimension_numbers<[1], [0], [0], [1], [0, 0, 1, 1], [], []>} : vector<8x512xbf16>, vector<512x384xbf16>, vector<8x384xf32> -> vector<8x384xf32>
    %c0_9 = arith.constant 0 : index
    %c0_10 = arith.constant 0 : index
    %12 = vector.load %arg5[%c0_9, %c0_10] : memref<1x384xf32, #tpu.memory_space<vmem>>, vector<1x384xf32>
    %13 = vector.broadcast %12 : vector<1x384xf32> to vector<8x384xf32>
    %14 = arith.addf %11, %13 : vector<8x384xf32>
    %cst_11 = arith.constant 0.000000e+00 : f32
    %15 = vector.broadcast %cst_11 : f32 to vector<8x384xf32>
    %16 = arith.maximumf %14, %15 : vector<8x384xf32>
    %17 = arith.truncf %16 : vector<8x384xf32> to vector<8x384xbf16>
    %c0_12 = arith.constant 0 : index
    %c0_13 = arith.constant 0 : index
    %18 = vector.load %arg6[%c0_12, %c0_13] : memref<384x128xbf16, #tpu.memory_space<vmem>>, vector<384x128xbf16>
    %cst_14 = arith.constant dense<0.000000e+00> : vector<8x128xf32>
    %19 = tpu.matmul %17, %18, %cst_14 {dimension_numbers = #tpu.dot_dimension_numbers<[1], [0], [0], [1], [0, 0, 1, 1], [], []>} : vector<8x384xbf16>, vector<384x128xbf16>, vector<8x128xf32> -> vector<8x128xf32>
    %c0_15 = arith.constant 0 : index
    %c0_16 = arith.constant 0 : index
    %20 = vector.load %arg7[%c0_15, %c0_16] : memref<1x128xf32, #tpu.memory_space<vmem>>, vector<1x128xf32>
    %21 = vector.broadcast %20 : vector<1x128xf32> to vector<8x128xf32>
    %22 = arith.addf %19, %21 : vector<8x128xf32>
    %c0_17 = arith.constant 0 : index
    %c0_18 = arith.constant 0 : index
    %23 = vector.load %arg8[%c0_17, %c0_18] : memref<8x128xf32, #tpu.memory_space<vmem>>, vector<8x128xf32>
    tpu.vector_store %arg8[%c0_17, %c0_18], %22 {strides = array<i32>} : memref<8x128xf32, #tpu.memory_space<vmem>>, vector<8x128xf32>,
    return
  }
  func.func @transform_0(%arg0: i32) -> (i32, i32) {
    %c0_i32 = arith.constant 0 : i32
    %c0_i32_0 = arith.constant 0 : i32
    return %arg0, %c0_i32 : i32, i32
  }
  func.func @transform_1(%arg0: i32) -> (i32, i32) {
    %c0_i32 = arith.constant 0 : i32
    %c0_i32_0 = arith.constant 0 : i32
    %c0_i32_1 = arith.constant 0 : i32
    return %c0_i32, %c0_i32_0 : i32, i32
  }
  func.func @transform_2(%arg0: i32) -> (i32, i32) {
    %c0_i32 = arith.constant 0 : i32
    %c0_i32_0 = arith.constant 0 : i32
    %c0_i32_1 = arith.constant 0 : i32
    return %c0_i32, %c0_i32_0 : i32, i32
  }
  func.func @transform_3(%arg0: i32) -> (i32, i32) {
    %c0_i32 = arith.constant 0 : i32
    %c0_i32_0 = arith.constant 0 : i32
    %c0_i32_1 = arith.constant 0 : i32
    return %c0_i32, %c0_i32_0 : i32, i32
  }
  func.func @transform_4(%arg0: i32) -> (i32, i32) {
    %c0_i32 = arith.constant 0 : i32
    %c0_i32_0 = arith.constant 0 : i32
    %c0_i32_1 = arith.constant 0 : i32
    return %c0_i32, %c0_i32_0 : i32, i32
  }
  func.func @transform_5(%arg0: i32) -> (i32, i32) {
    %c0_i32 = arith.constant 0 : i32
    %c0_i32_0 = arith.constant 0 : i32
    %c0_i32_1 = arith.constant 0 : i32
    return %c0_i32, %c0_i32_0 : i32, i32
  }
  func.func @transform_6(%arg0: i32) -> (i32, i32) {
    %c0_i32 = arith.constant 0 : i32
    %c0_i32_0 = arith.constant 0 : i32
    %c0_i32_1 = arith.constant 0 : i32
    return %c0_i32, %c0_i32_0 : i32, i32
  }
  func.func @transform_7(%arg0: i32) -> (i32, i32) {
    %c0_i32 = arith.constant 0 : i32
    %c0_i32_0 = arith.constant 0 : i32
    return %arg0, %c0_i32 : i32, i32
  }
}

</mosaic_0001>

<bundles_post_ra>
// kernel: tpu_custom_call.1
= control target key start
LH: loop header
LB: loop body
LE: loop exit
PB: predicated region body
PF: predicated region fallthrough
CT: control target
= control target key end

     0   :  { %12 = vsyncpa [#allocation3], 0  ;;  %s2451_s0 = inlined_call_operand.hbm [shape: f32[8,128], index: 0, kind: input, shape index: {}]   ;;  %s2452_s1 = inlined_call_operand.hbm [shape: bf16[128,512], index: 1, kind: input, shape index: {}]   ;;  %s2453_s2 = inlined_call_operand.hbm [shape: f32[1,512], index: 2, kind: input, shape index: {}]   ;;  %s2454_s3 = inlined_call_operand.hbm [shape: bf16[512,384], index: 3, kind: input, shape index: {}]   ;;  %s2455_s4 = inlined_call_operand.vmem [shape: f32[1,384], index: 4, kind: input, shape index: {}]   ;;  %s2456_s5 = inlined_call_operand.hbm [shape: bf16[384,128], index: 5, kind: input, shape index: {}]   ;;  %s2457_s6 = inlined_call_operand.vmem [shape: f32[1,128], index: 6, kind: input, shape index: {}]   ;;  %s2458_s7 = inlined_call_operand.hbm [shape: f32[8,128], index: 7, kind: output, shape index: {}]  }
   0x1   :  { %13 = vsyncpa [#allocation6], 0 }
   0x2   :  { %14 = vsyncpa [#allocation9], 0  ;;  %s31_s26 = sshll.u32 %s2452_s1, 4  ;;  %s32_s26 = int_to_ptr.hbm [resolvable:$true] %s31_s26 }
   0x3   :  { %15 = vsyncpa [#allocation4], 0  ;;  %s2355_s27 = smov [#allocation5]   ;;  %s55_s8 = sshll.u32 %s2454_s3, 4  ;;  %s56_s8 = int_to_ptr.hbm [resolvable:$true] %s55_s8 }
   0x4   :  { %s33_s28 = sshll.u32 %s2355_s27, 4  ;;  %s2356_s9 = smov 256   ;;  %s34_s28 = int_to_ptr.vmem [resolvable:$true] %s33_s28 }
   0x5   :  { %s2357_s10 = smov 16   ;;  %s2358_s11 = smov [#allocation8]  }
   0x6   :  { %39 = dma.hbm_to_vmem [thread:$0]  %s32_s26, 4096, %s34_s28, [#allocation6], %s2356_s9, %s2356_s9, %s2357_s10  }
   0x7   :  { %s57_s12 = sshll.u32 %s2358_s11, 4  ;;  %s2359_s13 = smov 192   ;;  %s58_s12 = int_to_ptr.vmem [resolvable:$true] %s57_s12 }
   0x8   :  { %s2360_s14 = smov 12   ;;  %s21_s16 = sshll.u32 %s2451_s0, 4  ;;  %s22_s16 = int_to_ptr.hbm [resolvable:$true] %s21_s16 }
   0x9   :  { %63 = dma.hbm_to_vmem [thread:$0]  %s56_s8, 12288, %s58_s12, [#allocation9], %s2359_s13, %s2359_s13, %s2360_s14  }
   0xa   :  { %s2361_s17 = smov [#allocation2]   ;;  %s45_s20 = sshll.u32 %s2453_s2, 4  ;;  %s46_s20 = int_to_ptr.hbm [resolvable:$true] %s45_s20 }
   0xb   :  { %s23_s18 = sshll.u32 %s2361_s17, 4  ;;  %s2362_s21 = smov [#allocation7]   ;;  %s24_s18 = int_to_ptr.vmem [resolvable:$true] %s23_s18 }
   0xc   :  { %26 = dma.hbm_to_vmem [thread:$0]  %s22_s16, 128, %s24_s18, [#allocation3]  }
   0xd   :  { %s47_s22 = sshll.u32 %s2362_s21, 4  ;;  %s70_s25 = sshll.u32 %s2456_s5, 4  ;;  %s48_s22 = int_to_ptr.vmem [resolvable:$true] %s47_s22  ;;  %s71_s25 = int_to_ptr.hbm [resolvable:$true] %s70_s25 }
   0xe   :  { %50 = dma.hbm_to_vmem [thread:$0]  %s46_s20, 64, %s48_s22, [#allocation6]  }
   0xf   :  { %s2363_s0 = smov [#allocation10]   ;;  %s2364_s27 = smov 64  }
  0x10   :  { %s72_s26 = sshll.u32 %s2363_s0, 4  ;;  %s2365_s28 = smov 4   ;;  %s73_s26 = int_to_ptr.vmem [resolvable:$true] %s72_s26 }
  0x11   :  { %78 = dma.hbm_to_vmem [thread:$0]  %s71_s25, 3072, %s73_s26, [#allocation9], %s2364_s27, %s2364_s27, %s2365_s28  }
  0x12   :  { %2347 = dma.done.wait [#allocation3], 128  }
  0x13   :  { %2348 = vsyncadd [#allocation3], 4294967168 }
  0x14   :  { %2349 = dma.done.wait [#allocation6], 4160  }
  0x15   :  { %2350 = vsyncadd [#allocation6], 4294963136 }
  0x16   :  { %2351 = dma.done.wait [#allocation9], 15360  }
  0x17   :  { %2352 = vsyncadd [#allocation9], 4294951936  ;;  %v1544_v0 = vld [vmem:[#allocation5 + $0xe0] sm:$0xf]  ;;  %v2068_v1 = vld [vmem:[#allocation5 + $0xec] sm:$0xf0] }
  0x18   :  { %v2066_v2 = vld [vmem:[#allocation5 + $0xe4] sm:$0xf]  ;;  %v1545_v3 = vor.u32 %v2068_v1, %v1544_v0  ;;  %v1546_v4 = vld [vmem:[#allocation5 + $0xf0] sm:$0xf0]  ;;  %v1552_v5 = vld [vmem:[#allocation5 + $0xe8] sm:$0xf] }
  0x19   :  { %v2069_v6 = vld [vmem:[#allocation5 + $0xf4] sm:$0xf0]  ;;  %v1549_v7 = vor.u32 %v2066_v2, %v1546_v4  ;;  %v2067_v9 = vld [vmem:[#allocation5 + $0xec] sm:$0xf]  ;;  %v1554_v10 = vld [vmem:[#allocation5 + $0xf8] sm:$0xf0] }
  0x1a   :  { %v1553_v8 = vor.u32 %v2069_v6, %v1552_v5  ;;  %v1528_v11 = vld [vmem:[#allocation5 + $0xc0] sm:$0xf]  ;;  %305 = vmatpush.bf16.msra.mxu0 %v1545_v3  ;;  %v1557_v12 = vor.u32 %v2067_v9, %v1554_v10  ;;  %v2064_v13 = vld [vmem:[#allocation5 + $0xcc] sm:$0xf0]  ;;  %v2062_v14 = vld [vmem:[#allocation5 + $0xc4] sm:$0xf] }
  0x1b   :  { %v1530_v15 = vld [vmem:[#allocation5 + $0xd0] sm:$0xf0]  ;;  %318 = vmatpush.bf16.msra.mxu1 %v1549_v7  ;;  %v1529_v16 = vor.u32 %v2064_v13, %v1528_v11  ;;  %v1536_v18 = vld [vmem:[#allocation5 + $0xc8] sm:$0xf]  ;;  %v2065_v19 = vld [vmem:[#allocation5 + $0xd4] sm:$0xf0] }
  0x1c   :  { %331 = vmatpush.bf16.msra.mxu2 %v1553_v8  ;;  %v1533_v17 = vor.u32 %v2062_v14, %v1530_v15  ;;  %v2063_v20 = vld [vmem:[#allocation5 + $0xcc] sm:$0xf]  ;;  %344 = vmatpush.bf16.msra.mxu3 %v1557_v12  ;;  %v1537_v21 = vor.u32 %v2065_v19, %v1536_v18  ;;  %v1538_v22 = vld [vmem:[#allocation5 + $0xd8] sm:$0xf0]  ;;  %v1512_v23 = vld [vmem:[#allocation5 + $0xa0] sm:$0xf] }
  0x1d   :  { %v2060_v24 = vld [vmem:[#allocation5 + $0xac] sm:$0xf0]  ;;  %v1541_v25 = vor.u32 %v2063_v20, %v1538_v22  ;;  %v2058_v26 = vld [vmem:[#allocation5 + $0xa4] sm:$0xf]  ;;  %v1514_v27 = vld [vmem:[#allocation5 + $0xb0] sm:$0xf0] }
  0x1e   :  { %v1520_v28 = vld [vmem:[#allocation5 + $0xa8] sm:$0xf]  ;;  %306 = vmatpush.bf16.msra.mxu0 %v1529_v16  ;;  %v1513_v29 = vor.u32 %v2060_v24, %v1512_v23  ;;  %v2061_v30 = vld [vmem:[#allocation5 + $0xb4] sm:$0xf0]  ;;  %v2059_v31 = vld [vmem:[#allocation5 + $0xac] sm:$0xf]  ;;  %v1517_v33 = vor.u32 %v2058_v26, %v1514_v27 }
  0x1f   :  { %v1522_v32 = vld [vmem:[#allocation5 + $0xb8] sm:$0xf0]  ;;  %319 = vmatpush.bf16.msra.mxu1 %v1533_v17  ;;  %v1521_v34 = vor.u32 %v2061_v30, %v1520_v28  ;;  %v1496_v35 = vld [vmem:[#allocation5 + $0x80] sm:$0xf]  ;;  %v2056_v36 = vld [vmem:[#allocation5 + $0x8c] sm:$0xf0] }
  0x20   :  { %332 = vmatpush.bf16.msra.mxu2 %v1537_v21  ;;  %v2054_v37 = vld [vmem:[#allocation5 + $0x84] sm:$0xf]  ;;  %345 = vmatpush.bf16.msra.mxu3 %v1541_v25  ;;  %v1525_v38 = vor.u32 %v2059_v31, %v1522_v32  ;;  %v1498_v39 = vld [vmem:[#allocation5 + $0x90] sm:$0xf0]  ;;  %v1504_v40 = vld [vmem:[#allocation5 + $0x88] sm:$0xf]  ;;  %v1497_v44 = vor.u32 %v2056_v36, %v1496_v35 }
  0x21   :  { %v2057_v41 = vld [vmem:[#allocation5 + $0x94] sm:$0xf0]  ;;  %v2055_v42 = vld [vmem:[#allocation5 + $0x8c] sm:$0xf]  ;;  %v1506_v43 = vld [vmem:[#allocation5 + $0x98] sm:$0xf0]  ;;  %v1501_v45 = vor.u32 %v2054_v37, %v1498_v39 }
  0x22   :  { %307 = vmatpush.bf16.msra.mxu0 %v1513_v29  ;;  %v1505_v46 = vor.u32 %v2057_v41, %v1504_v40  ;;  %v1480_v47 = vld [vmem:[#allocation5 + $0x60] sm:$0xf]  ;;  %v2052_v48 = vld [vmem:[#allocation5 + $0x6c] sm:$0xf0]  ;;  %v2050_v49 = vld [vmem:[#allocation5 + $0x64] sm:$0xf]  ;;  %v1509_v50 = vor.u32 %v2055_v42, %v1506_v43 }
  0x23   :  { %320 = vmatpush.bf16.msra.mxu1 %v1517_v33  ;;  %v1482_v51 = vld [vmem:[#allocation5 + $0x70] sm:$0xf0]  ;;  %v1488_v52 = vld [vmem:[#allocation5 + $0x68] sm:$0xf]  ;;  %v2053_v53 = vld [vmem:[#allocation5 + $0x74] sm:$0xf0]  ;;  %v1481_v56 = vor.u32 %v2052_v48, %v1480_v47 }
  0x24   :  { %333 = vmatpush.bf16.msra.mxu2 %v1521_v34  ;;  %346 = vmatpush.bf16.msra.mxu3 %v1525_v38  ;;  %v2051_v54 = vld [vmem:[#allocation5 + $0x6c] sm:$0xf]  ;;  %v1490_v55 = vld [vmem:[#allocation5 + $0x78] sm:$0xf0]  ;;  %v1485_v57 = vor.u32 %v2050_v49, %v1482_v51  ;;  %v1489_v58 = vor.u32 %v2053_v53, %v1488_v52  ;;  %v1464_v59 = vld [vmem:[#allocation5 + $0x40] sm:$0xf] }
  0x25   :  { %v2048_v60 = vld [vmem:[#allocation5 + $0x4c] sm:$0xf0]  ;;  %v2046_v61 = vld [vmem:[#allocation5 + $0x44] sm:$0xf]  ;;  %v1493_v62 = vor.u32 %v2051_v54, %v1490_v55  ;;  %v1466_v63 = vld [vmem:[#allocation5 + $0x50] sm:$0xf0] }
  0x26   :  { %308 = vmatpush.bf16.msra.mxu0 %v1497_v44  ;;  %v1472_v0 = vld [vmem:[#allocation5 + $0x48] sm:$0xf]  ;;  %v2049_v1 = vld [vmem:[#allocation5 + $0x54] sm:$0xf0]  ;;  %v2047_v2 = vld [vmem:[#allocation5 + $0x4c] sm:$0xf]  ;;  %v1465_v4 = vor.u32 %v2048_v60, %v1464_v59  ;;  %v1469_v5 = vor.u32 %v2046_v61, %v1466_v63 }
  0x27   :  { %321 = vmatpush.bf16.msra.mxu1 %v1501_v45  ;;  %v1474_v3 = vld [vmem:[#allocation5 + $0x58] sm:$0xf0]  ;;  %v1473_v6 = vor.u32 %v2049_v1, %v1472_v0  ;;  %v1448_v7 = vld [vmem:[#allocation5 + $0x20] sm:$0xf]  ;;  %v2044_v8 = vld [vmem:[#allocation5 + $0x2c] sm:$0xf0] }
  0x28   :  { %334 = vmatpush.bf16.msra.mxu2 %v1505_v46  ;;  %347 = vmatpush.bf16.msra.mxu3 %v1509_v50  ;;  %v2042_v9 = vld [vmem:[#allocation5 + $0x24] sm:$0xf]  ;;  %v1477_v10 = vor.u32 %v2047_v2, %v1474_v3  ;;  %v1450_v11 = vld [vmem:[#allocation5 + $0x30] sm:$0xf0]  ;;  %v1456_v12 = vld [vmem:[#allocation5 + $0x28] sm:$0xf]  ;;  %v1449_v16 = vor.u32 %v2044_v8, %v1448_v7 }
  0x29   :  { %v2045_v13 = vld [vmem:[#allocation5 + $0x34] sm:$0xf0]  ;;  %v2043_v14 = vld [vmem:[#allocation5 + $0x2c] sm:$0xf]  ;;  %v1458_v15 = vld [vmem:[#allocation5 + $0x38] sm:$0xf0]  ;;  %v1453_v18 = vor.u32 %v2042_v9, %v1450_v11 }
  0x2a   :  { %309 = vmatpush.bf16.msra.mxu0 %v1481_v56  ;;  %v1432_v17 = vld [vmem:[#allocation5] sm:$0xf]  ;;  %v1457_v19 = vor.u32 %v2045_v13, %v1456_v12  ;;  %v2040_v20 = vld [vmem:[#allocation5 + $0xc] sm:$0xf0]  ;;  %v2038_v21 = vld [vmem:[#allocation5 + $0x4] sm:$0xf]  ;;  %v1461_v23 = vor.u32 %v2043_v14, %v1458_v15 }
  0x2b   :  { %322 = vmatpush.bf16.msra.mxu1 %v1485_v57  ;;  %v1434_v22 = vld [vmem:[#allocation5 + $0x10] sm:$0xf0]  ;;  %v1440_v24 = vld [vmem:[#allocation5 + $0x8] sm:$0xf]  ;;  %v2041_v25 = vld [vmem:[#allocation5 + $0x14] sm:$0xf0]  ;;  %v1433_v30 = vor.u32 %v2040_v20, %v1432_v17 }
  0x2c   :  { %335 = vmatpush.bf16.msra.mxu2 %v1489_v58  ;;  %348 = vmatpush.bf16.msra.mxu3 %v1493_v62  ;;  %v2039_v26 = vld [vmem:[#allocation5 + $0xc] sm:$0xf]  ;;  %v1442_v27 = vld [vmem:[#allocation5 + $0x18] sm:$0xf0]  ;;  %v2092_v29 = vld [vmem:[#allocation8 + $0xb0] sm:$0xf0]  ;;  %v1437_v34 = vor.u32 %v2038_v21, %v1434_v22  ;;  %v1441_v35 = vor.u32 %v2041_v25, %v1440_v24 }
  0x2d   :  { %v1644_v28 = vld [vmem:[#allocation8 + $0xa8] sm:$0xf]  ;;  %v101_v31 = vld [vmem:[#allocation2] sm:$0xff]  ;;  %v1445_v36 = vor.u32 %v2039_v26, %v1442_v27  ;;  %v1632_v38 = vld [vmem:[#allocation8 + $0x90] sm:$0xf]  ;;  %s2366_s30 = smov [#allocation11]  }
  0x2e   :  { %310 = vmatpush.bf16.msra.mxu0 %v1465_v4  ;;  %v1740_v32 = vld [vmem:[#allocation8 + $0x168] sm:$0xf]  ;;  %v2116_v33 = vld [vmem:[#allocation8 + $0x170] sm:$0xf0]  ;;  %v1645_v37 = vor.u32 %v2092_v29, %v1644_v28  ;;  %v102_v41 = vpack.c.bf16 %v101_v31, %v101_v31  ;;  %v2089_v43 = vld [vmem:[#allocation8 + $0x98] sm:$0xf0] }
  0x2f   :  { %323 = vmatpush.bf16.msra.mxu1 %v1469_v5  ;;  %v1836_v39 = vld [vmem:[#allocation8 + $0x228] sm:$0xf]  ;;  %v2140_v40 = vld [vmem:[#allocation8 + $0x230] sm:$0xf0]  ;;  %v1741_v42 = vor.u32 %v2116_v33, %v1740_v32  ;;  %v1728_v46 = vld [vmem:[#allocation8 + $0x150] sm:$0xf]  ;;  %v1633_v49 = vor.u32 %v2089_v43, %v1632_v38 }
  0x30   :  { %336 = vmatpush.bf16.msra.mxu2 %v1473_v6  ;;  %349 = vmatpush.bf16.msra.mxu3 %v1477_v10  ;;  %v1932_v44 = vld [vmem:[#allocation8 + $0x2e8] sm:$0xf]  ;;  %v2164_v45 = vld [vmem:[#allocation8 + $0x2f0] sm:$0xf0]  ;;  %v2113_v47 = vld [vmem:[#allocation8 + $0x158] sm:$0xf0]  ;;  %v1837_v48 = vor.u32 %v2140_v40, %v1836_v39 }
  0x31   :  { %v1933_v50 = vor.u32 %v2164_v45, %v1932_v44  ;;  %v1620_v51 = vld [vmem:[#allocation8 + $0x78] sm:$0xf]  ;;  %v1824_v52 = vld [vmem:[#allocation8 + $0x210] sm:$0xf]  ;;  %v2137_v53 = vld [vmem:[#allocation8 + $0x218] sm:$0xf0]  ;;  %v1729_v54 = vor.u32 %v2113_v47, %v1728_v46 }
  0x32   :  { %311 = vmatpush.bf16.msra.mxu0 %v1449_v16  ;;  %v2086_v55 = vld [vmem:[#allocation8 + $0x80] sm:$0xf0]  ;;  %v1920_v56 = vld [vmem:[#allocation8 + $0x2d0] sm:$0xf]  ;;  %v2161_v57 = vld [vmem:[#allocation8 + $0x2d8] sm:$0xf0]  ;;  %v1825_v60 = vor.u32 %v2137_v53, %v1824_v52 }
  0x33   :  { %324 = vmatpush.bf16.msra.mxu1 %v1453_v18  ;;  %v1716_v58 = vld [vmem:[#allocation8 + $0x138] sm:$0xf]  ;;  %v2110_v59 = vld [vmem:[#allocation8 + $0x140] sm:$0xf0]  ;;  %v1621_v61 = vor.u32 %v2086_v55, %v1620_v51  ;;  %v1921_v62 = vor.u32 %v2161_v57, %v1920_v56  ;;  %v1608_v63 = vld [vmem:[#allocation8 + $0x60] sm:$0xf] }
  0x34   :  { %337 = vmatpush.bf16.msra.mxu2 %v1457_v19  ;;  %350 = vmatpush.bf16.msra.mxu3 %v1461_v23  ;;  %v1812_v0 = vld [vmem:[#allocation8 + $0x1f8] sm:$0xf]  ;;  %v2134_v1 = vld [vmem:[#allocation8 + $0x200] sm:$0xf0]  ;;  %v1717_v2 = vor.u32 %v2110_v59, %v1716_v58  ;;  %v2083_v3 = vld [vmem:[#allocation8 + $0x68] sm:$0xf0] }
  0x35   :  { %v1908_v4 = vld [vmem:[#allocation8 + $0x2b8] sm:$0xf]  ;;  %v2158_v5 = vld [vmem:[#allocation8 + $0x2c0] sm:$0xf0]  ;;  %v1704_v6 = vld [vmem:[#allocation8 + $0x120] sm:$0xf]  ;;  %v1813_v8 = vor.u32 %v2134_v1, %v1812_v0  ;;  %v1609_v9 = vor.u32 %v2083_v3, %v1608_v63 }
  0x36   :  { %312 = vmatpush.bf16.msra.mxu0 %v1433_v30  ;;  %v2107_v7 = vld [vmem:[#allocation8 + $0x128] sm:$0xf0]  ;;  %v1909_v10 = vor.u32 %v2158_v5, %v1908_v4  ;;  %v1596_v11 = vld [vmem:[#allocation8 + $0x48] sm:$0xf]  ;;  %v1800_v12 = vld [vmem:[#allocation8 + $0x1e0] sm:$0xf] }
  0x37   :  { %325 = vmatpush.bf16.msra.mxu1 %v1437_v34  ;;  %v2131_v13 = vld [vmem:[#allocation8 + $0x1e8] sm:$0xf0]  ;;  %v1705_v14 = vor.u32 %v2107_v7, %v1704_v6  ;;  %v2080_v15 = vld [vmem:[#allocation8 + $0x50] sm:$0xf0]  ;;  %v1896_v16 = vld [vmem:[#allocation8 + $0x2a0] sm:$0xf] }
  0x38   :  { %338 = vmatpush.bf16.msra.mxu2 %v1441_v35  ;;  %351 = vmatpush.bf16.msra.mxu3 %v1445_v36  ;;  %v2155_v17 = vld [vmem:[#allocation8 + $0x2a8] sm:$0xf0]  ;;  %v1692_v18 = vld [vmem:[#allocation8 + $0x108] sm:$0xf]  ;;  %v2104_v19 = vld [vmem:[#allocation8 + $0x110] sm:$0xf0]  ;;  %v1801_v20 = vor.u32 %v2131_v13, %v1800_v12  ;;  %v1597_v21 = vor.u32 %v2080_v15, %v1596_v11 }
  0x39   :  { %313 = vmatmul.bf16.vlgmr.msra.gmra.mxu0 %v102_v41  ;;  %v1897_v22 = vor.u32 %v2155_v17, %v1896_v16  ;;  %v1584_v23 = vld [vmem:[#allocation8 + $0x30] sm:$0xf]  ;;  %v1788_v24 = vld [vmem:[#allocation8 + $0x1c8] sm:$0xf]  ;;  %v2128_v25 = vld [vmem:[#allocation8 + $0x1d0] sm:$0xf0]  ;;  %v1693_v26 = vor.u32 %v2104_v19, %v1692_v18 }
  0x3a   :  { %1013 = vmatpush.bf16.msrb.mxu0 %v1645_v37  ;;  %326 = vmatmul.bf16.vlgmr.msra.gmra.mxu1 %v102_v41  ;;  %v2077_v27 = vld [vmem:[#allocation8 + $0x38] sm:$0xf0]  ;;  %v1884_v28 = vld [vmem:[#allocation8 + $0x288] sm:$0xf]  ;;  %v2152_v29 = vld [vmem:[#allocation8 + $0x290] sm:$0xf0]  ;;  %v1789_v32 = vor.u32 %v2128_v25, %v1788_v24 }
  0x3b   :  { %1026 = vmatpush.bf16.msrb.mxu1 %v1741_v42  ;;  %339 = vmatmul.bf16.vlgmr.msra.gmra.mxu2 %v102_v41  ;;  %v1680_v30 = vld [vmem:[#allocation8 + $0xf0] sm:$0xf]  ;;  %v2101_v31 = vld [vmem:[#allocation8 + $0xf8] sm:$0xf0]  ;;  %v1585_v33 = vor.u32 %v2077_v27, %v1584_v23  ;;  %v1885_v34 = vor.u32 %v2152_v29, %v1884_v28  ;;  %v1572_v35 = vld [vmem:[#allocation8 + $0x18] sm:$0xf] }
  0x3c   :  { %352 = vmatmul.bf16.vlgmr.msra.gmra.mxu3 %v102_v41  ;;  %1039 = vmatpush.bf16.msrb.mxu2 %v1837_v48  ;;  %v1776_v36 = vld [vmem:[#allocation8 + $0x1b0] sm:$0xf]  ;;  %v2125_v37 = vld [vmem:[#allocation8 + $0x1b8] sm:$0xf0]  ;;  %v1681_v38 = vor.u32 %v2101_v31, %v1680_v30  ;;  %v2074_v39 = vld [vmem:[#allocation8 + $0x20] sm:$0xf0] }
  0x3d   :  { %1052 = vmatpush.bf16.msrb.mxu3 %v1933_v50  ;;  %v1872_v40 = vld [vmem:[#allocation8 + $0x270] sm:$0xf]  ;;  %v2149_v41 = vld [vmem:[#allocation8 + $0x278] sm:$0xf0]  ;;  %v1668_v42 = vld [vmem:[#allocation8 + $0xd8] sm:$0xf]  ;;  %v1777_v44 = vor.u32 %v2125_v37, %v1776_v36  ;;  %v1573_v46 = vor.u32 %v2074_v39, %v1572_v35 }
  0x3e   :  { %1014 = vmatpush.bf16.msrb.mxu0 %v1633_v49  ;;  %v2098_v43 = vld [vmem:[#allocation8 + $0xe0] sm:$0xf0]  ;;  %v1560_v45 = vld [vmem:[#allocation8] sm:$0xf]  ;;  %v1873_v47 = vor.u32 %v2149_v41, %v1872_v40  ;;  %v2071_v48 = vld [vmem:[#allocation8 + $0x8] sm:$0xf0] }
  0x3f   :  { %1027 = vmatpush.bf16.msrb.mxu1 %v1729_v54  ;;  %v1764_v49 = vld [vmem:[#allocation8 + $0x198] sm:$0xf]  ;;  %v2122_v50 = vld [vmem:[#allocation8 + $0x1a0] sm:$0xf0]  ;;  %v1669_v51 = vor.u32 %v2098_v43, %v1668_v42  ;;  %v1656_v52 = vld [vmem:[#allocation8 + $0xc0] sm:$0xf] }
  0x40   :  { %1040 = vmatpush.bf16.msrb.mxu2 %v1825_v60  ;;  %v1860_v53 = vld [vmem:[#allocation8 + $0x258] sm:$0xf]  ;;  %v2146_v54 = vld [vmem:[#allocation8 + $0x260] sm:$0xf0]  ;;  %v2095_v55 = vld [vmem:[#allocation8 + $0xc8] sm:$0xf0]  ;;  %v1765_v60 = vor.u32 %v2122_v50, %v1764_v49 }
  0x41   :  { %1053 = vmatpush.bf16.msrb.mxu3 %v1921_v62  ;;  %v2091_v56 = vld [vmem:[#allocation8 + $0xac] sm:$0xf]  ;;  %v1646_v57 = vld [vmem:[#allocation8 + $0xb4] sm:$0xf0]  ;;  %v1861_v62 = vor.u32 %v2146_v54, %v1860_v53  ;;  %v2088_v63 = vld [vmem:[#allocation8 + $0x94] sm:$0xf]  ;;  %v1657_v3 = vor.u32 %v2095_v55, %v1656_v52 }
  0x42   :  { %1015 = vmatpush.bf16.msrb.mxu0 %v1621_v61  ;;  %v2115_v58 = vld [vmem:[#allocation8 + $0x16c] sm:$0xf]  ;;  %v1742_v59 = vld [vmem:[#allocation8 + $0x174] sm:$0xf0]  ;;  %v1561_v61 = vor.u32 %v2071_v48, %v1560_v45  ;;  %v1752_v0 = vld [vmem:[#allocation8 + $0x180] sm:$0xf]  ;;  %v1649_v4 = vor.u32 %v2091_v56, %v1646_v57 }
  0x43   :  { %1028 = vmatpush.bf16.msrb.mxu1 %v1717_v2  ;;  %v2119_v1 = vld [vmem:[#allocation8 + $0x188] sm:$0xf0]  ;;  %v1848_v2 = vld [vmem:[#allocation8 + $0x240] sm:$0xf]  ;;  %v1838_v7 = vld [vmem:[#allocation8 + $0x234] sm:$0xf0] }
  0x44   :  { %1041 = vmatpush.bf16.msrb.mxu2 %v1813_v8  ;;  %v2143_v5 = vld [vmem:[#allocation8 + $0x248] sm:$0xf0]  ;;  %v1745_v8 = vor.u32 %v2115_v58, %v1742_v59  ;;  %v1934_v11 = vld [vmem:[#allocation8 + $0x2f4] sm:$0xf0]  ;;  %v2112_v12 = vld [vmem:[#allocation8 + $0x154] sm:$0xf] }
  0x45   :  { %1054 = vmatpush.bf16.msrb.mxu3 %v1909_v10  ;;  %v2139_v6 = vld [vmem:[#allocation8 + $0x22c] sm:$0xf]  ;;  %v1730_v13 = vld [vmem:[#allocation8 + $0x15c] sm:$0xf0]  ;;  %v1849_v15 = vor.u32 %v2143_v5, %v1848_v2  ;;  %v2085_v19 = vld [vmem:[#allocation8 + $0x7c] sm:$0xf] }
  0x46   :  { %1016 = vmatpush.bf16.msrb.mxu0 %v1609_v9  ;;  %v1634_v9 = vld [vmem:[#allocation8 + $0x9c] sm:$0xf0]  ;;  %v2163_v10 = vld [vmem:[#allocation8 + $0x2ec] sm:$0xf]  ;;  %v1841_v16 = vor.u32 %v2139_v6, %v1838_v7  ;;  %v1622_v23 = vld [vmem:[#allocation8 + $0x84] sm:$0xf0] }
  0x47   :  { %1029 = vmatpush.bf16.msrb.mxu1 %v1705_v14  ;;  %v1753_v14 = vor.u32 %v2119_v1, %v1752_v0  ;;  %v1637_v17 = vor.u32 %v2088_v63, %v1634_v9  ;;  %v1937_v18 = vor.u32 %v2163_v10, %v1934_v11  ;;  %v2160_v24 = vld [vmem:[#allocation8 + $0x2d4] sm:$0xf]  ;;  %v1922_v25 = vld [vmem:[#allocation8 + $0x2dc] sm:$0xf0]  ;;  %v1718_v27 = vld [vmem:[#allocation8 + $0x144] sm:$0xf0]  ;;  %v1625_v29 = vor.u32 %v2085_v19, %v1622_v23 }
  0x48   :  { %1042 = vmatpush.bf16.msrb.mxu2 %v1801_v20  ;;  %v2136_v20 = vld [vmem:[#allocation8 + $0x214] sm:$0xf]  ;;  %v1925_v30 = vor.u32 %v2160_v24, %v1922_v25  ;;  %v2082_v31 = vld [vmem:[#allocation8 + $0x64] sm:$0xf]  ;;  %v1610_v35 = vld [vmem:[#allocation8 + $0x6c] sm:$0xf0] }
  0x49   :  { %1055 = vmatpush.bf16.msrb.mxu3 %v1897_v22  ;;  %v1733_v22 = vor.u32 %v2112_v12, %v1730_v13  ;;  %v2157_v36 = vld [vmem:[#allocation8 + $0x2bc] sm:$0xf]  ;;  %v1910_v37 = vld [vmem:[#allocation8 + $0x2c4] sm:$0xf0]  ;;  %v1706_v39 = vld [vmem:[#allocation8 + $0x12c] sm:$0xf0]  ;;  %v1613_v41 = vor.u32 %v2082_v31, %v1610_v35 }
  0x4a   :  { %1017 = vmatpush.bf16.msrb.mxu0 %v1597_v21  ;;  %v1826_v21 = vld [vmem:[#allocation8 + $0x21c] sm:$0xf0]  ;;  %v1913_v42 = vor.u32 %v2157_v36, %v1910_v37  ;;  %v2079_v43 = vld [vmem:[#allocation8 + $0x4c] sm:$0xf]  ;;  %v1802_v45 = vld [vmem:[#allocation8 + $0x1ec] sm:$0xf0] }
  0x4b   :  { %1030 = vmatpush.bf16.msrb.mxu1 %v1693_v26  ;;  %v2109_v26 = vld [vmem:[#allocation8 + $0x13c] sm:$0xf]  ;;  %v1829_v28 = vor.u32 %v2136_v20, %v1826_v21  ;;  %v2154_v48 = vld [vmem:[#allocation8 + $0x2a4] sm:$0xf]  ;;  %v1898_v49 = vld [vmem:[#allocation8 + $0x2ac] sm:$0xf0] }
  0x4c   :  { %1043 = vmatpush.bf16.msrb.mxu2 %v1789_v32  ;;  %v2133_v32 = vld [vmem:[#allocation8 + $0x1fc] sm:$0xf]  ;;  %v2103_v50 = vld [vmem:[#allocation8 + $0x10c] sm:$0xf]  ;;  %v1901_v54 = vor.u32 %v2154_v48, %v1898_v49  ;;  %v2076_v56 = vld [vmem:[#allocation8 + $0x34] sm:$0xf] }
  0x4d   :  { %1056 = vmatpush.bf16.msrb.mxu3 %v1885_v34  ;;  %v1721_v34 = vor.u32 %v2109_v26, %v1718_v27  ;;  %v1586_v57 = vld [vmem:[#allocation8 + $0x3c] sm:$0xf0]  ;;  %v2100_v58 = vld [vmem:[#allocation8 + $0xf4] sm:$0xf]  ;;  %v1790_v63 = vld [vmem:[#allocation8 + $0x1d4] sm:$0xf0] }
  0x4e   :  { %1018 = vmatpush.bf16.msrb.mxu0 %v1585_v33  ;;  %v1814_v33 = vld [vmem:[#allocation8 + $0x204] sm:$0xf0]  ;;  %v1682_v59 = vld [vmem:[#allocation8 + $0xfc] sm:$0xf0]  ;;  %v2151_v0 = vld [vmem:[#allocation8 + $0x28c] sm:$0xf] }
  0x4f   :  { %1031 = vmatpush.bf16.msrb.mxu1 %v1681_v38  ;;  %v2106_v38 = vld [vmem:[#allocation8 + $0x124] sm:$0xf]  ;;  %v1817_v40 = vor.u32 %v2133_v32, %v1814_v33  ;;  %v1886_v2 = vld [vmem:[#allocation8 + $0x294] sm:$0xf0]  ;;  %v1574_v5 = vld [vmem:[#allocation8 + $0x24] sm:$0xf0] }
  0x50   :  { %1044 = vmatpush.bf16.msrb.mxu2 %v1777_v44  ;;  %v2130_v44 = vld [vmem:[#allocation8 + $0x1e4] sm:$0xf]  ;;  %v2097_v6 = vld [vmem:[#allocation8 + $0xdc] sm:$0xf]  ;;  %v2124_v10 = vld [vmem:[#allocation8 + $0x1b4] sm:$0xf] }
  0x51   :  { %1057 = vmatpush.bf16.msrb.mxu3 %v1873_v47  ;;  %v1598_v47 = vld [vmem:[#allocation8 + $0x54] sm:$0xf0]  ;;  %v1805_v52 = vor.u32 %v2130_v44, %v1802_v45  ;;  %v1778_v11 = vld [vmem:[#allocation8 + $0x1bc] sm:$0xf0]  ;;  %v2148_v12 = vld [vmem:[#allocation8 + $0x274] sm:$0xf] }
  0x52   :  { %1019 = vmatpush.bf16.msrb.mxu0 %v1573_v46  ;;  %v1709_v46 = vor.u32 %v2106_v38, %v1706_v39  ;;  %v1601_v53 = vor.u32 %v2079_v43, %v1598_v47  ;;  %v1781_v13 = vor.u32 %v2124_v10, %v1778_v11  ;;  %v2094_v19 = vld [vmem:[#allocation8 + $0xc4] sm:$0xf]  ;;  %v1658_v20 = vld [vmem:[#allocation8 + $0xcc] sm:$0xf0]  ;;  %v1766_v23 = vld [vmem:[#allocation8 + $0x1a4] sm:$0xf0] }
  0x53   :  { %1032 = vmatpush.bf16.msrb.mxu1 %v1669_v51  ;;  %v1694_v51 = vld [vmem:[#allocation8 + $0x114] sm:$0xf0]  ;;  %v1661_v21 = vor.u32 %v2094_v19, %v1658_v20  ;;  %v2145_v25 = vld [vmem:[#allocation8 + $0x25c] sm:$0xf]  ;;  %v1862_v26 = vld [vmem:[#allocation8 + $0x264] sm:$0xf0] }
  0x54   :  { %1045 = vmatpush.bf16.msrb.mxu2 %v1765_v60  ;;  %v1697_v55 = vor.u32 %v2103_v50, %v1694_v51  ;;  %v1589_v60 = vor.u32 %v2076_v56, %v1586_v57  ;;  %v1865_v27 = vor.u32 %v2145_v25, %v1862_v26  ;;  %v2142_v31 = vld [vmem:[#allocation8 + $0x244] sm:$0xf]  ;;  %v1850_v32 = vld [vmem:[#allocation8 + $0x24c] sm:$0xf0]  ;;  %v2117_v44 = vld [vmem:[#allocation8 + $0x178] sm:$0xf0] }
  0x55   :  { %1058 = vmatpush.bf16.msrb.mxu3 %v1861_v62  ;;  %v2127_v62 = vld [vmem:[#allocation8 + $0x1cc] sm:$0xf]  ;;  %v1853_v33 = vor.u32 %v2142_v31, %v1850_v32  ;;  %v1748_v43 = vld [vmem:[#allocation8 + $0x170] sm:$0xf]  ;;  %v2114_v56 = vld [vmem:[#allocation8 + $0x160] sm:$0xf0] }
  0x56   :  { %1020 = vmatpush.bf16.msrb.mxu0 %v1561_v61  ;;  %v1685_v61 = vor.u32 %v2100_v58, %v1682_v59  ;;  %v1793_v1 = vor.u32 %v2127_v62, %v1790_v63  ;;  %v1749_v51 = vor.u32 %v2117_v44, %v1748_v43  ;;  %v1844_v62 = vld [vmem:[#allocation8 + $0x230] sm:$0xf]  ;;  %v2141_v63 = vld [vmem:[#allocation8 + $0x238] sm:$0xf0]  ;;  %v2162_v20 = vld [vmem:[#allocation8 + $0x2e0] sm:$0xf0] }
  0x57   :  { %1033 = vmatpush.bf16.msrb.mxu1 %v1657_v3  ;;  %v1889_v3 = vor.u32 %v2151_v0, %v1886_v2  ;;  %v1940_v0 = vld [vmem:[#allocation8 + $0x2f0] sm:$0xf]  ;;  %v1845_v11 = vor.u32 %v2141_v63, %v1844_v62  ;;  %v2135_v31 = vld [vmem:[#allocation8 + $0x208] sm:$0xf0]  ;;  %v1676_v63 = vld [vmem:[#allocation8 + $0xe0] sm:$0xf] }
  0x58   :  { %1046 = vmatpush.bf16.msrb.mxu2 %v1753_v14  ;;  %v1874_v14 = vld [vmem:[#allocation8 + $0x27c] sm:$0xf0]  ;;  %v2075_v62 = vld [vmem:[#allocation8 + $0x28] sm:$0xf0]  ;;  %s1416_s8 = sshll.u32 %s2366_s30, 4  ;;  %s1418_s11 = sshll.u32 %s2458_s7, 4  ;;  %s1417_s8 = int_to_ptr.vmem [resolvable:$true] %s1416_s8  ;;  %s1419_s11 = int_to_ptr.hbm [resolvable:$true] %s1418_s11 }
  0x59   :  { %1059 = vmatpush.bf16.msrb.mxu3 %v1849_v15  ;;  %v1877_v15 = vor.u32 %v2148_v12, %v1874_v14 }
  0x5a   :  { %1065 = vmatpush.bf16.msra.mxu0 %v1649_v4  ;;  %v2073_v4 = vld [vmem:[#allocation8 + $0x1c] sm:$0xf] }
  0x5b   :  { %1078 = vmatpush.bf16.msra.mxu1 %v1745_v8  ;;  %v1577_v7 = vor.u32 %v2073_v4, %v1574_v5  ;;  %v1670_v8 = vld [vmem:[#allocation8 + $0xe4] sm:$0xf0]  ;;  %v2165_v4 = vld [vmem:[#allocation8 + $0x2f8] sm:$0xf0]  ;;  %v1628_v5 = vld [vmem:[#allocation8 + $0x80] sm:$0xf] }
  0x5c   :  { %1091 = vmatpush.bf16.msra.mxu2 %v1841_v16  ;;  %v1673_v9 = vor.u32 %v2097_v6, %v1670_v8  ;;  %v2070_v16 = vld [vmem:[#allocation8 + $0x4] sm:$0xf]  ;;  %v2087_v6 = vld [vmem:[#allocation8 + $0x88] sm:$0xf0]  ;;  %v1724_v8 = vld [vmem:[#allocation8 + $0x140] sm:$0xf] }
  0x5d   :  { %1104 = vmatpush.bf16.msra.mxu3 %v1937_v18  ;;  %v1629_v14 = vor.u32 %v2087_v6, %v1628_v5 }
  0x5e   :  { %1066 = vmatpush.bf16.msra.mxu0 %v1637_v17  ;;  %v1562_v17 = vld [vmem:[#allocation8 + $0xc] sm:$0xf0] }
  0x5f   :  { %1079 = vmatpush.bf16.msra.mxu1 %v1733_v22  ;;  %v1565_v18 = vor.u32 %v2070_v16, %v1562_v17  ;;  %v2121_v22 = vld [vmem:[#allocation8 + $0x19c] sm:$0xf]  ;;  %v2138_v16 = vld [vmem:[#allocation8 + $0x220] sm:$0xf0]  ;;  %v1928_v17 = vld [vmem:[#allocation8 + $0x2d8] sm:$0xf] }
  0x60   :  { %1092 = vmatpush.bf16.msra.mxu2 %v1829_v28  ;;  %v1769_v24 = vor.u32 %v2121_v22, %v1766_v23  ;;  %v2118_v28 = vld [vmem:[#allocation8 + $0x184] sm:$0xf]  ;;  %v2084_v22 = vld [vmem:[#allocation8 + $0x70] sm:$0xf0]  ;;  %v1712_v23 = vld [vmem:[#allocation8 + $0x128] sm:$0xf] }
  0x61   :  { %1105 = vmatpush.bf16.msra.mxu3 %v1925_v30 }
  0x62   :  { %1067 = vmatpush.bf16.msra.mxu0 %v1625_v29  ;;  %v1754_v29 = vld [vmem:[#allocation8 + $0x18c] sm:$0xf0] }
  0x63   :  { %1080 = vmatpush.bf16.msra.mxu1 %v1721_v34  ;;  %v1757_v30 = vor.u32 %v2118_v28, %v1754_v29  ;;  %v135_v34 = vld [vmem:[#allocation7] sm:$0xf]  ;;  %v1929_v28 = vor.u32 %v2162_v20, %v1928_v17  ;;  %v2123_v17 = vld [vmem:[#allocation8 + $0x1a8] sm:$0xf0] }
  0x64   :  { %1093 = vmatpush.bf16.msra.mxu2 %v1817_v40  ;;  %v137_v35 = vperm.slane %v135_v34, 0  ;;  %v138_v36 = vperm.slane %v135_v34, 1  ;;  %v1652_v40 = vld [vmem:[#allocation8 + $0xb0] sm:$0xf]  ;;  %v139_v47 = vperm.slane %v135_v34, 2  ;;  %v140_v50 = vperm.slane %v135_v34, 3 }
  0x65   :  { %1106 = vmatpush.bf16.msra.mxu3 %v1913_v42  ;;  %v2159_v34 = vld [vmem:[#allocation8 + $0x2c8] sm:$0xf0] }
  0x66   :  { %1068 = vmatpush.bf16.msra.mxu0 %v1613_v41  ;;  %v2093_v41 = vld [vmem:[#allocation8 + $0xb8] sm:$0xf0] }
  0x67   :  { %1081 = vmatpush.bf16.msra.mxu1 %v1709_v46  ;;  %v1653_v48 = vor.u32 %v2093_v41, %v1652_v40  ;;  %v1808_v41 = vld [vmem:[#allocation8 + $0x1e8] sm:$0xf] }
  0x68   :  { %1094 = vmatpush.bf16.msra.mxu2 %v1805_v52  ;;  %v1640_v52 = vld [vmem:[#allocation8 + $0x98] sm:$0xf] }
  0x69   :  { %1107 = vmatpush.bf16.msra.mxu3 %v1901_v54 }
  0x6a   :  { %1069 = vmatpush.bf16.msra.mxu0 %v1601_v53  ;;  %v2090_v53 = vld [vmem:[#allocation8 + $0xa0] sm:$0xf0] }
  0x6b   :  { %1082 = vmatpush.bf16.msra.mxu1 %v1697_v55  ;;  %v1736_v55 = vld [vmem:[#allocation8 + $0x158] sm:$0xf] }
  0x6c   :  { %1095 = vmatpush.bf16.msra.mxu2 %v1793_v1 }
  0x6d   :  { %1108 = vmatpush.bf16.msra.mxu3 %v1889_v3  ;;  %v1737_v3 = vor.u32 %v2114_v56, %v1736_v55  ;;  %v1796_v55 = vld [vmem:[#allocation8 + $0x1d0] sm:$0xf]  ;;  %v2129_v56 = vld [vmem:[#allocation8 + $0x1d8] sm:$0xf0] }
  0x6e   :  { %1070 = vmatpush.bf16.msra.mxu0 %v1589_v60 }
  0x6f   :  { %1083 = vmatpush.bf16.msra.mxu1 %v1685_v61  ;;  %v1641_v61 = vor.u32 %v2090_v53, %v1640_v52 }
  0x70   :  { %1096 = vmatpush.bf16.msra.mxu2 %v1781_v13  ;;  %v1941_v13 = vor.u32 %v2165_v4, %v1940_v0  ;;  %v2099_v0 = vld [vmem:[#allocation8 + $0xe8] sm:$0xf0]  ;;  %v2126_v4 = vld [vmem:[#allocation8 + $0x1c0] sm:$0xf0] }
  0x71   :  { %1109 = vmatpush.bf16.msra.mxu3 %v1877_v15  ;;  %v1832_v15 = vld [vmem:[#allocation8 + $0x218] sm:$0xf]  ;;  %v1677_v6 = vor.u32 %v2099_v0, %v1676_v63 }
  0x72   :  { %1071 = vmatpush.bf16.msra.mxu0 %v1577_v7  ;;  %v1833_v26 = vor.u32 %v2138_v16, %v1832_v15  ;;  %v1772_v16 = vld [vmem:[#allocation8 + $0x1a0] sm:$0xf] }
  0x73   :  { %1084 = vmatpush.bf16.msra.mxu1 %v1673_v9  ;;  %v2111_v9 = vld [vmem:[#allocation8 + $0x148] sm:$0xf0] }
  0x74   :  { %1097 = vmatpush.bf16.msra.mxu2 %v1769_v24  ;;  %v1725_v19 = vor.u32 %v2111_v9, %v1724_v8  ;;  %v2108_v24 = vld [vmem:[#allocation8 + $0x130] sm:$0xf0]  ;;  %v2150_v8 = vld [vmem:[#allocation8 + $0x280] sm:$0xf0]  ;;  %v1568_v9 = vld [vmem:[#allocation8 + $0x8] sm:$0xf] }
  0x75   :  { %1110 = vmatpush.bf16.msra.mxu3 %v1865_v27  ;;  %v1713_v32 = vor.u32 %v2108_v24, %v1712_v23  ;;  %v2173_v23 = vld [vmem:[#allocation10 + $0x38] sm:$0xff]  ;;  %v1773_v24 = vor.u32 %v2123_v17, %v1772_v16 }
  0x76   :  { %1072 = vmatpush.bf16.msra.mxu0 %v1565_v18 }
  0x77   :  { %1085 = vmatpush.bf16.msra.mxu1 %v1661_v21  ;;  %v1616_v21 = vld [vmem:[#allocation8 + $0x68] sm:$0xf] }
  0x78   :  { %1098 = vmatpush.bf16.msra.mxu2 %v1757_v30  ;;  %v1617_v29 = vor.u32 %v2084_v22, %v1616_v21  ;;  %v1820_v30 = vld [vmem:[#allocation8 + $0x200] sm:$0xf]  ;;  %v2147_v22 = vld [vmem:[#allocation8 + $0x268] sm:$0xf0] }
  0x79   :  { %1111 = vmatpush.bf16.msra.mxu3 %v1853_v33  ;;  %v1916_v33 = vld [vmem:[#allocation8 + $0x2c0] sm:$0xf] }
  0x7a   :  { %v1917_v40 = vor.u32 %v2159_v34, %v1916_v33  ;;  %v1868_v21 = vld [vmem:[#allocation8 + $0x260] sm:$0xf]  ;;  %v2171_v33 = vld [vmem:[#allocation10 + $0x28] sm:$0xff] }
  0x7b   :  { %v2170_v34 = vld [vmem:[#allocation10 + $0x20] sm:$0xff] }
  0xb6   :  { %v314_v37 = vpop.f32.mrf.mxu0 }
  0xb7   :  { %v315_v38 = vadd.f32 %v314_v37, %v137_v35  ;;  %v327_v39 = vpop.f32.mrf.mxu1  ;;  %v1604_v35 = vld [vmem:[#allocation8 + $0x50] sm:$0xf] }
  0xb8   :  { %v328_v42 = vadd.f32 %v327_v39, %v138_v36  ;;  %v2081_v36 = vld [vmem:[#allocation8 + $0x58] sm:$0xf0]  ;;  %v1700_v37 = vld [vmem:[#allocation8 + $0x110] sm:$0xf]  ;;  %v1821_v39 = vor.u32 %v2135_v31, %v1820_v30 }
  0xb9   :  { %v357_v45 = vmax.f32 %v315_v38, 0.0  ;;  %v2105_v38 = vld [vmem:[#allocation8 + $0x118] sm:$0xf0]  ;;  %v1605_v43 = vor.u32 %v2081_v36, %v1604_v35  ;;  %v2172_v30 = vld [vmem:[#allocation10 + $0x30] sm:$0xff] }
  0xba   :  { %v358_v46 = vmax.f32 %v328_v42, 0.0  ;;  %v2132_v42 = vld [vmem:[#allocation8 + $0x1f0] sm:$0xf0]  ;;  %v1701_v44 = vor.u32 %v2105_v38, %v1700_v37  ;;  %v2181_v35 = vld [vmem:[#allocation10 + $0x78] sm:$0xff]  ;;  %v2179_v38 = vld [vmem:[#allocation10 + $0x68] sm:$0xff] }
  0xbb   :  { %v2422_v49 = vpack.c.bf16 %v357_v45, %v357_v45  ;;  %v1904_v45 = vld [vmem:[#allocation8 + $0x2a8] sm:$0xf]  ;;  %v1809_v52 = vor.u32 %v2132_v42, %v1808_v41  ;;  %v2169_v36 = vld [vmem:[#allocation10 + $0x18] sm:$0xff]  ;;  %v2168_v37 = vld [vmem:[#allocation10 + $0x10] sm:$0xff] }
  0xbc   :  { %v2424_v54 = vpack.c.bf16 %v358_v46, %v358_v46  ;;  %v2156_v46 = vld [vmem:[#allocation8 + $0x2b0] sm:$0xf0] }
  0xbd   :  { %1021 = vmatmul.bf16.vlgmr.msrb.gmra.mxu0 %v2422_v49  ;;  %v1905_v53 = vor.u32 %v2156_v46, %v1904_v45  ;;  %v2176_v41 = vld [vmem:[#allocation10 + $0x50] sm:$0xff] }
  0xbe   :  { %v340_v57 = vpop.f32.mrf.mxu2  ;;  %1034 = vmatmul.bf16.vlgmr.msrb.gmra.mxu1 %v2424_v54  ;;  %v316_v60 = vpop.f32.mrf.mxu0  ;;  %1117 = vmatpush.bf16.msrb.mxu0 %v1653_v48  ;;  %v2078_v48 = vld [vmem:[#allocation8 + $0x40] sm:$0xf0]  ;;  %v2188_v42 = vld [vmem:[#allocation10 + $0xb0] sm:$0xff] }
  0xbf   :  { %v341_v58 = vadd.f32 %v340_v57, %v139_v47  ;;  %v353_v59 = vpop.f32.mrf.mxu3  ;;  %1130 = vmatpush.bf16.msrb.mxu1 %v1749_v51  ;;  %v329_v2 = vpop.f32.mrf.mxu1  ;;  %v1592_v47 = vld [vmem:[#allocation8 + $0x38] sm:$0xf]  ;;  %v2102_v51 = vld [vmem:[#allocation8 + $0x100] sm:$0xf0]  ;;  %v2153_v60 = vld [vmem:[#allocation8 + $0x298] sm:$0xf0] }
  0xc0   :  { %v354_v1 = vadd.f32 %v353_v59, %v140_v50  ;;  %v1688_v50 = vld [vmem:[#allocation8 + $0xf8] sm:$0xf]  ;;  %v1593_v57 = vor.u32 %v2078_v48, %v1592_v47  ;;  %v1892_v59 = vld [vmem:[#allocation8 + $0x290] sm:$0xf]  ;;  %v493_v45 = vld [vmem:[%s2455_s4] sm:$0x7] }
  0xc1   :  { %v359_v7 = vmax.f32 %v341_v58, 0.0  ;;  %v1689_v58 = vor.u32 %v2102_v51, %v1688_v50  ;;  %v1893_v2 = vor.u32 %v2153_v60, %v1892_v59  ;;  %v495_v48 = vperm.slane %v493_v45, 0  ;;  %v2174_v50 = vld [vmem:[#allocation10 + $0x40] sm:$0xff] }
  0xc2   :  { %v360_v10 = vmax.f32 %v354_v1, 0.0  ;;  %1118 = vmatpush.bf16.msrb.mxu0 %v1641_v61  ;;  %v1580_v61 = vld [vmem:[#allocation8 + $0x20] sm:$0xf]  ;;  %v1797_v1 = vor.u32 %v2129_v56, %v1796_v55 }
  0xc3   :  { %v2428_v12 = vpack.c.bf16 %v359_v7, %v359_v7  ;;  %1131 = vmatpush.bf16.msrb.mxu1 %v1737_v3  ;;  %v1784_v3 = vld [vmem:[#allocation8 + $0x1b8] sm:$0xf]  ;;  %v1581_v5 = vor.u32 %v2075_v62, %v1580_v61  ;;  %v2186_v51 = vld [vmem:[#allocation10 + $0xa0] sm:$0xff]  ;;  %v2183_v62 = vld [vmem:[#allocation10 + $0x88] sm:$0xff] }
  0xc4   :  { %v2430_v18 = vpack.c.bf16 %v360_v10, %v360_v10  ;;  %v1880_v7 = vld [vmem:[#allocation8 + $0x278] sm:$0xf]  ;;  %v2072_v10 = vld [vmem:[#allocation8 + $0x10] sm:$0xf0] }
  0xc5   :  { %1047 = vmatmul.bf16.vlgmr.msrb.gmra.mxu2 %v2428_v12  ;;  %v1881_v15 = vor.u32 %v2150_v8, %v1880_v7 }
  0xc6   :  { %1060 = vmatmul.bf16.vlgmr.msrb.gmra.mxu3 %v2430_v18  ;;  %v342_v25 = vpop.f32.mrf.mxu2  ;;  %1143 = vmatpush.bf16.msrb.mxu2 %v1845_v11  ;;  %v1664_v11 = vld [vmem:[#allocation8 + $0xc8] sm:$0xf] }
  0xc7   :  { %v355_v27 = vpop.f32.mrf.mxu3  ;;  %1156 = vmatpush.bf16.msrb.mxu3 %v1941_v13  ;;  %1119 = vmatpush.bf16.msrb.mxu0 %v1629_v14  ;;  %v2096_v13 = vld [vmem:[#allocation8 + $0xd0] sm:$0xf0]  ;;  %v1785_v14 = vor.u32 %v2126_v4, %v1784_v3  ;;  %v1869_v25 = vor.u32 %v2147_v22, %v1868_v21  ;;  %v2182_v3 = vld [vmem:[#allocation10 + $0x80] sm:$0xff]  ;;  %v497_v22 = vperm.slane %v493_v45, 2 }
  0xc8   :  { %1132 = vmatpush.bf16.msrb.mxu1 %v1725_v19  ;;  %v1569_v19 = vor.u32 %v2072_v10, %v1568_v9  ;;  %v1665_v20 = vor.u32 %v2096_v13, %v1664_v11  ;;  %v2120_v27 = vld [vmem:[#allocation8 + $0x190] sm:$0xf0] }
  0xca   :  { %1144 = vmatpush.bf16.msrb.mxu2 %v1833_v26  ;;  %v1760_v26 = vld [vmem:[#allocation8 + $0x188] sm:$0xf] }
  0xcb   :  { %1157 = vmatpush.bf16.msrb.mxu3 %v1929_v28  ;;  %1120 = vmatpush.bf16.msrb.mxu0 %v1617_v29  ;;  %v1856_v28 = vld [vmem:[#allocation8 + $0x248] sm:$0xf]  ;;  %v2144_v29 = vld [vmem:[#allocation8 + $0x250] sm:$0xf0]  ;;  %v1761_v31 = vor.u32 %v2120_v27, %v1760_v26 }
  0xcc   :  { %1133 = vmatpush.bf16.msrb.mxu1 %v1713_v32  ;;  %v1857_v32 = vor.u32 %v2144_v29, %v1856_v28 }
  0xcd   :  { %1073 = vmatmul.bf16.vlgmr.msra.gmra.mxu0 %v2422_v49 }
  0xce   :  { %1145 = vmatpush.bf16.msrb.mxu2 %v1821_v39  ;;  %1086 = vmatmul.bf16.vlgmr.msra.gmra.mxu1 %v2424_v54  ;;  %v2166_v39 = vld [vmem:[#allocation10] sm:$0xff] }
  0xcf   :  { %1158 = vmatpush.bf16.msrb.mxu3 %v1917_v40  ;;  %1121 = vmatpush.bf16.msrb.mxu0 %v1605_v43  ;;  %v2178_v40 = vld [vmem:[#allocation10 + $0x60] sm:$0xff]  ;;  %v2175_v43 = vld [vmem:[#allocation10 + $0x48] sm:$0xff] }
  0xd0   :  { %1134 = vmatpush.bf16.msrb.mxu1 %v1701_v44  ;;  %v2187_v44 = vld [vmem:[#allocation10 + $0xa8] sm:$0xff] }
  0xd2   :  { %1146 = vmatpush.bf16.msrb.mxu2 %v1809_v52 }
  0xd3   :  { %1159 = vmatpush.bf16.msrb.mxu3 %v1905_v53  ;;  %1122 = vmatpush.bf16.msrb.mxu0 %v1593_v57  ;;  %v2185_v53 = vld [vmem:[#allocation10 + $0x98] sm:$0xff] }
  0xd4   :  { %1135 = vmatpush.bf16.msrb.mxu1 %v1689_v58  ;;  %v2184_v58 = vld [vmem:[#allocation10 + $0x90] sm:$0xff] }
  0xd5   :  { %1099 = vmatmul.bf16.vlgmr.msra.gmra.mxu2 %v2428_v12 }
  0xd6   :  { %1112 = vmatmul.bf16.vlgmr.msra.gmra.mxu3 %v2430_v18  ;;  %1147 = vmatpush.bf16.msrb.mxu2 %v1797_v1 }
  0xd7   :  { %1160 = vmatpush.bf16.msrb.mxu3 %v1893_v2  ;;  %1123 = vmatpush.bf16.msrb.mxu0 %v1581_v5  ;;  %v496_v5 = vperm.slane %v493_v45, 1 }
  0xd8   :  { %1136 = vmatpush.bf16.msrb.mxu1 %v1677_v6 }
  0xda   :  { %1148 = vmatpush.bf16.msrb.mxu2 %v1785_v14 }
  0xdb   :  { %1161 = vmatpush.bf16.msrb.mxu3 %v1881_v15  ;;  %1124 = vmatpush.bf16.msrb.mxu0 %v1569_v19 }
  0xdc   :  { %1137 = vmatpush.bf16.msrb.mxu1 %v1665_v20 }
  0xde   :  { %1149 = vmatpush.bf16.msrb.mxu2 %v1773_v24  ;;  %1125 = vmatmul.bf16.vlgmr.msrb.gmra.mxu0 %v2422_v49  ;;  %v2180_v49 = vld [vmem:[#allocation10 + $0x70] sm:$0xff] }
  0xdf   :  { %1371 = vmatpush.bf16.msra.mxu0 %v2173_v23  ;;  %1162 = vmatpush.bf16.msrb.mxu3 %v1869_v25 }
  0xe0   :  { %1138 = vmatmul.bf16.vlgmr.msrb.gmra.mxu1 %v2424_v54  ;;  %v2167_v54 = vld [vmem:[#allocation10 + $0x8] sm:$0xff] }
  0xe1   :  { %1384 = vmatpush.bf16.msra.mxu1 %v2181_v35 }
  0xe2   :  { %1150 = vmatpush.bf16.msrb.mxu2 %v1761_v31 }
  0xe3   :  { %1372 = vmatpush.bf16.msra.mxu0 %v2172_v30  ;;  %1163 = vmatpush.bf16.msrb.mxu3 %v1857_v32 }
  0xe5   :  { %1151 = vmatmul.bf16.vlgmr.msrb.gmra.mxu2 %v2428_v12  ;;  %1385 = vmatpush.bf16.msra.mxu1 %v2180_v49  ;;  %v2177_v12 = vld [vmem:[#allocation10 + $0x58] sm:$0xff] }
  0xe6   :  { %1164 = vmatmul.bf16.vlgmr.msrb.gmra.mxu3 %v2430_v18  ;;  %v2189_v18 = vld [vmem:[#allocation10 + $0xb8] sm:$0xff] }
  0xe7   :  { %1373 = vmatpush.bf16.msra.mxu0 %v2171_v33  ;;  %1397 = vmatpush.bf16.msra.mxu2 %v2189_v18 }
  0xe9   :  { %1386 = vmatpush.bf16.msra.mxu1 %v2179_v38 }
  0xeb   :  { %1374 = vmatpush.bf16.msra.mxu0 %v2170_v34  ;;  %1398 = vmatpush.bf16.msra.mxu2 %v2188_v42 }
  0xed   :  { %1387 = vmatpush.bf16.msra.mxu1 %v2178_v40 }
  0xef   :  { %1375 = vmatpush.bf16.msra.mxu0 %v2169_v36  ;;  %1399 = vmatpush.bf16.msra.mxu2 %v2187_v44 }
  0xf1   :  { %1388 = vmatpush.bf16.msra.mxu1 %v2177_v12 }
  0xf3   :  { %1376 = vmatpush.bf16.msra.mxu0 %v2168_v37  ;;  %1400 = vmatpush.bf16.msra.mxu2 %v2186_v51 }
  0xf5   :  { %1389 = vmatpush.bf16.msra.mxu1 %v2176_v41 }
  0xf7   :  { %1377 = vmatpush.bf16.msra.mxu0 %v2167_v54  ;;  %1401 = vmatpush.bf16.msra.mxu2 %v2185_v53 }
  0xf9   :  { %1390 = vmatpush.bf16.msra.mxu1 %v2175_v43 }
  0xfb   :  { %1378 = vmatpush.bf16.msra.mxu0 %v2166_v39  ;;  %1402 = vmatpush.bf16.msra.mxu2 %v2184_v58  ;;  %v2202_v39 = vld [vmem:[%s2457_s6] ss:$0 sm:$0xff] }
  0xfd   :  { %1391 = vmatpush.bf16.msra.mxu1 %v2174_v50 }
  0xff   :  { %1403 = vmatpush.bf16.msra.mxu2 %v2183_v62 }
 0x103   :  { %1404 = vmatpush.bf16.msra.mxu2 %v2182_v3 }
 0x13a   :  { %v1022_v46 = vpop.f32.mrf.mxu0 }
 0x13b   :  { %v1035_v47 = vpop.f32.mrf.mxu1  ;;  %v1023_v52 = vadd.f32 %v1022_v46, %v495_v48 }
 0x13d   :  { %v1036_v57 = vadd.f32 %v1035_v47, %v1023_v52 }
 0x142   :  { %v1024_v55 = vpop.f32.mrf.mxu0 }
 0x143   :  { %v1037_v56 = vpop.f32.mrf.mxu1 }
 0x148   :  { %v1048_v59 = vpop.f32.mrf.mxu2 }
 0x149   :  { %v1049_v60 = vadd.f32 %v1048_v59, %v1036_v57  ;;  %v1061_v61 = vpop.f32.mrf.mxu3 }
 0x14a   :  { %v1074_v0 = vpop.f32.mrf.mxu0 }
 0x14b   :  { %v1062_v63 = vadd.f32 %v1061_v61, %v1049_v60  ;;  %v1087_v1 = vpop.f32.mrf.mxu1  ;;  %v1075_v8 = vadd.f32 %v1074_v0, %v496_v5 }
 0x14d   :  { %v1169_v2 = vmax.f32 %v1062_v63, 0.0  ;;  %v1088_v11 = vadd.f32 %v1087_v1, %v1075_v8 }
 0x14f   :  { %v1172_v4 = vpack.c.bf16 %v1169_v2, %v1169_v2 }
 0x150   :  { %v1050_v6 = vpop.f32.mrf.mxu2 }
 0x151   :  { %v1063_v7 = vpop.f32.mrf.mxu3  ;;  %1379 = vmatmul.bf16.vlgmr.msra.gmra.mxu0 %v1172_v4 }
 0x152   :  { %v1076_v9 = vpop.f32.mrf.mxu0 }
 0x153   :  { %v1089_v10 = vpop.f32.mrf.mxu1 }
 0x158   :  { %v1100_v13 = vpop.f32.mrf.mxu2 }
 0x159   :  { %v1101_v14 = vadd.f32 %v1100_v13, %v1088_v11  ;;  %v1113_v15 = vpop.f32.mrf.mxu3 }
 0x15b   :  { %v1114_v16 = vadd.f32 %v1113_v15, %v1101_v14  ;;  %v1126_v17 = vpop.f32.mrf.mxu0 }
 0x15c   :  { %v1127_v25 = vadd.f32 %v1126_v17, %v497_v22 }
 0x15d   :  { %v1170_v19 = vmax.f32 %v1114_v16, 0.0  ;;  %v1139_v20 = vpop.f32.mrf.mxu1 }
 0x15e   :  { %v1140_v28 = vadd.f32 %v1139_v20, %v1127_v25 }
 0x15f   :  { %v1173_v21 = vpack.c.bf16 %v1170_v19, %v1170_v19 }
 0x160   :  { %v1102_v23 = vpop.f32.mrf.mxu2 }
 0x161   :  { %v1115_v24 = vpop.f32.mrf.mxu3  ;;  %1392 = vmatmul.bf16.vlgmr.msra.gmra.mxu1 %v1173_v21 }
 0x163   :  { %v1128_v26 = vpop.f32.mrf.mxu0 }
 0x165   :  { %v1141_v27 = vpop.f32.mrf.mxu1 }
 0x168   :  { %v1152_v29 = vpop.f32.mrf.mxu2 }
 0x169   :  { %v1153_v30 = vadd.f32 %v1152_v29, %v1140_v28  ;;  %v1165_v31 = vpop.f32.mrf.mxu3 }
 0x16b   :  { %v1166_v32 = vadd.f32 %v1165_v31, %v1153_v30 }
 0x16d   :  { %v1171_v33 = vmax.f32 %v1166_v32, 0.0 }
 0x16f   :  { %v1174_v34 = vpack.c.bf16 %v1171_v33, %v1171_v33 }
 0x170   :  { %v1154_v35 = vpop.f32.mrf.mxu2 }
 0x171   :  { %v1167_v36 = vpop.f32.mrf.mxu3  ;;  %1405 = vmatmul.bf16.vlgmr.msra.gmra.mxu2 %v1174_v34 }
 0x1ce   :  { %v1380_v37 = vpop.f32.mrf.mxu0 }
 0x1cf   :  { %v1381_v40 = vadd.f32 %v2202_v39, %v1380_v37 }
 0x1d6   :  { %v1382_v49 = vpop.f32.mrf.mxu0 }
 0x1de   :  { %v1393_v54 = vpop.f32.mrf.mxu1 }
 0x1df   :  { %v1394_v12 = vadd.f32 %v1393_v54, %v1381_v40 }
 0x1e6   :  { %v1395_v38 = vpop.f32.mrf.mxu1 }
 0x1f4   :  { %v1406_v18 = vpop.f32.mrf.mxu2 }
 0x1f5   :  { %v1407_v41 = vadd.f32 %v1406_v18, %v1394_v12 }
 0x1f7   :  { %1410 = vst [vmem:[#allocation11] sm:$0xff] %v1407_v41 }
 0x1f8   :  { %1421 = dma.vmem_to_hbm [thread:$0]  %s1417_s8, 128, %s1419_s11, [#allocation4]  }
 0x1fc   :  { %v1408_v42 = vpop.f32.mrf.mxu2 }
 0x1fd   :  { %2353 = dma.done.wait [#allocation4], 128  }
 0x1fe   :  { %2354 = vsyncadd [#allocation4], 4294967168 }
 0x1ff   :  { %1426 = vsyncpa [#allocation3], 1 }
 0x200   :  { %1427 = vsyncpa [#allocation6], 1 }
 0x201   :  { %1428 = vsyncpa [#allocation9], 1 }
 0x202   :  { %1429 = vsyncpa [#allocation4], 1 }

</bundles_post_ra>
